<compile_context>
chip_gen: v7x
topology: tpu7x:2x2x1
jax: 0.10.0
libtpu: 0.0.40
codegen_flags: <defaults>
</compile_context>

<pallas_src>
import functools

import jax
import jax.lax as lax
import jax.numpy as jnp
from jax.experimental import pallas as pl
from jax.experimental.pallas import tpu as pltpu

HIDDEN = 28
PDROP = 0.4


def _round_up(x: int, m: int) -> int:
    return (x + m - 1) // m * m


def _splitmix32(x):
    """Portable uint32 hash (splitmix32 finalizer), vector-friendly."""
    x = (x ^ (x >> 16)) * jnp.uint32(0x7FEB352D)
    x = (x ^ (x >> 15)) * jnp.uint32(0x846CA68B)
    x = x ^ (x >> 16)
    return x


def regnet_kernel(seed_ref, xt_ref, w1_ref, b1_ref, w2_ref, b2_ref, ot_ref,
                  *, pdrop, training, tile_n):
    # xt_ref: (2, T)   w1_ref: (H, 2)   b1_ref: (H, 1)
    # w2_ref: (2, H)   b2_ref: (2, 1)   ot_ref: (2, T)
    xt = xt_ref[...]
    w1 = w1_ref[...]

    # ---- fc1 + ReLU : K=2 contraction -> keep it off the MXU, two broadcast FMAs ----
    h = w1[:, 0:1] * xt[0:1, :] + w1[:, 1:2] * xt[1:2, :] + b1_ref[...]   # (H, T)
    h = jnp.maximum(h, 0.0)

    # ---- dropout (training semantics of nn.Dropout); 1/(1-p) is folded into W2 ----
    if training and pdrop > 0.0:
        seed_u = seed_ref[0].astype(jnp.uint32)
        row = lax.broadcasted_iota(jnp.uint32, h.shape, 0)                # feature idx
        col = lax.broadcasted_iota(jnp.uint32, h.shape, 1)                # local batch idx
        gcol = col + (pl.program_id(0) * tile_n).astype(jnp.uint32)       # global batch idx
        ctr = gcol * jnp.uint32(32) + row                                 # unique per element
        state = ctr ^ (seed_u * jnp.uint32(0x9E3779B9))
        bits = _splitmix32(_splitmix32(state) ^ jnp.uint32(0x85EBCA6B))   # uint32 randoms
        thresh = jnp.uint32(min(int(round(pdrop * 2.0 ** 32)), 2 ** 32 - 1))
        keep = bits >= thresh                                             # P(keep) = 1 - p
        h = jnp.where(keep, h, 0.0)

    # ---- fc2 : (2, H) @ (H, T) -> lane-dense (2, T) output ----
    ot_ref[...] = (jnp.dot(w2_ref[...], h, preferred_element_type=jnp.float32)
                   + b2_ref[...]).astype(ot_ref.dtype)


def regnet_forward(x, w1, b1, w2, b2, seed, *, pdrop=PDROP, training=True,
                   tile_n=1024):
    """x: (N, 2) f32.  w1: (hidden, 2), b1: (hidden,), w2: (2, hidden), b2: (2,)
    (torch nn.Linear layouts).  Returns (N, 2) f32."""
    n, f_in = x.shape
    hdim = w1.shape[0]
    f_out = w2.shape[0]

    # Batch tiling: lane-dense tiles (multiple of 128), biggest that makes sense for N.
    tile_n = _round_up(max(128, min(tile_n, _round_up(n, 128))), 128)
    n_pad = _round_up(n, tile_n)
    grid = (n_pad // tile_n,)

    # Lane-dense layout: batch on lanes.
    xt = jnp.pad(x.T, ((0, 0), (0, n_pad - n)))                  # (2, n_pad)
    w2_used = w2 * (1.0 / (1.0 - pdrop)) if (training and pdrop > 0.0) else w2

    kernel = functools.partial(regnet_kernel, pdrop=pdrop, training=training,
                               tile_n=tile_n)

    grid_spec = pltpu.PrefetchScalarGridSpec(
        num_scalar_prefetch=1,                                   # seed lives in SMEM
        grid=grid,
        in_specs=[
            pl.BlockSpec((f_in, tile_n), lambda i, s: (0, i)),   # x^T tile (pipelined)
            pl.BlockSpec((hdim, f_in),   lambda i, s: (0, 0)),   # W1 (resident)
            pl.BlockSpec((hdim, 1),      lambda i, s: (0, 0)),   # b1
            pl.BlockSpec((f_out, hdim),  lambda i, s: (0, 0)),   # W2 (pre-scaled)
            pl.BlockSpec((f_out, 1),     lambda i, s: (0, 0)),   # b2
        ],
        out_specs=pl.BlockSpec((f_out, tile_n), lambda i, s: (0, i)),
    )

    out_t = pl.pallas_call(
        kernel,
        out_shape=jax.ShapeDtypeStruct((f_out, n_pad), jnp.float32),
        grid_spec=grid_spec,
        compiler_params=pltpu.CompilerParams(
            dimension_semantics=("parallel",),                   # shard tiles on v7x's 2 TCs
            vmem_limit_bytes=32 * 1024 * 1024),
    )(seed, xt, w1, b1.reshape(hdim, 1), w2_used, b2.reshape(f_out, 1))

    return out_t[:, :n].T                                        # back to (N, 2)


def init_params(key, hidden=HIDDEN):
    """Torch nn.Linear-style init (uniform +/- 1/sqrt(fan_in)), torch layouts."""
    k1, k2, k3, k4 = jax.random.split(key, 4)
    lim1 = 1.0 / jnp.sqrt(2.0)
    lim2 = 1.0 / jnp.sqrt(float(hidden))
    w1 = jax.random.uniform(k1, (hidden, 2), jnp.float32, -lim1, lim1)   # fc1.weight
    b1 = jax.random.uniform(k2, (hidden,),   jnp.float32, -lim1, lim1)   # fc1.bias
    w2 = jax.random.uniform(k3, (2, hidden), jnp.float32, -lim2, lim2)   # fc2.weight
    b2 = jax.random.uniform(k4, (2,),        jnp.float32, -lim2, lim2)   # fc2.bias
    return w1, b1, w2, b2


if __name__ == "__main__":
    key = jax.random.PRNGKey(0)
    kx, kp = jax.random.split(key)

    batch = 8
    x = jax.random.normal(kx, (batch, 2), jnp.float32)
    w1, b1, w2, b2 = init_params(kp)
    seed = jnp.array([1234], dtype=jnp.int32)

    # training-mode forward (dropout active, fresh torch module semantics)
    out_train = regnet_forward(x, w1, b1, w2, b2, seed, training=True)
    # eval-mode forward (dropout == identity) for a deterministic reference check
    out_eval = regnet_forward(x, w1, b1, w2, b2, seed, training=False)

    jax.block_until_ready(out_train)
    jax.block_until_ready(out_eval)

    # pure-JAX reference for the eval path (torch layouts: y = x @ W.T + b)
    ref = jnp.maximum(x @ w1.T + b1, 0.0) @ w2.T + b2
    assert out_eval.shape == (batch, 2)
    assert out_train.shape == (batch, 2)
    assert jnp.allclose(out_eval, ref, atol=1e-5, rtol=1e-5)
    assert bool(jnp.all(jnp.isfinite(out_train)))

    print("KERNEL_OK")
</pallas_src>

<mosaic_0001>
module attributes {stable_mosaic.version = 11 : i64} {
  func.func @regnet_kernel(%arg0: i32, %arg1: memref<1xi32, #tpu.memory_space<smem>>, %arg2: memref<2x128xf32, #tpu.memory_space<vmem>>, %arg3: memref<28x2xf32, #tpu.memory_space<vmem>>, %arg4: memref<28x1xf32, #tpu.memory_space<vmem>>, %arg5: memref<2x28xf32, #tpu.memory_space<vmem>>, %arg6: memref<2x1xf32, #tpu.memory_space<vmem>>, %arg7: memref<2x128xf32, #tpu.memory_space<vmem>>) attributes {dimension_semantics = [#tpu.dimension_semantics<parallel>], iteration_bounds = array<i64: 1>, scalar_prefetch = 1 : i64, scratch_operands = 0 : i64, tpu.core_type = #tpu.core_type<tc>, window_params = [{transform_indices = @transform_0, window_bounds = array<i64: 2, 128>}, {pipeline_mode = #tpu.pipeline_mode<synchronous>, transform_indices = @transform_1, window_bounds = array<i64: 28, 2>}, {pipeline_mode = #tpu.pipeline_mode<synchronous>, transform_indices = @transform_2, window_bounds = array<i64: 28, 1>}, {pipeline_mode = #tpu.pipeline_mode<synchronous>, transform_indices = @transform_3, window_bounds = array<i64: 2, 28>}, {pipeline_mode = #tpu.pipeline_mode<synchronous>, transform_indices = @transform_4, window_bounds = array<i64: 2, 1>}, {transform_indices = @transform_5, window_bounds = array<i64: 2, 128>}]} {
    %c0 = arith.constant 0 : index
    %c0_0 = arith.constant 0 : index
    %0 = vector.load %arg2[%c0, %c0_0] : memref<2x128xf32, #tpu.memory_space<vmem>>, vector<2x128xf32>
    %c0_1 = arith.constant 0 : index
    %c0_2 = arith.constant 0 : index
    %1 = vector.load %arg3[%c0_1, %c0_2] : memref<28x2xf32, #tpu.memory_space<vmem>>, vector<28x2xf32>
    %2 = vector.extract_strided_slice %1 {offsets = [0, 0], sizes = [28, 1], strides = [1, 1]} : vector<28x2xf32> to vector<28x1xf32>
    %3 = vector.extract_strided_slice %0 {offsets = [0, 0], sizes = [1, 128], strides = [1, 1]} : vector<2x128xf32> to vector<1x128xf32>
    %4 = vector.broadcast %2 : vector<28x1xf32> to vector<28x128xf32>
    %5 = vector.broadcast %3 : vector<1x128xf32> to vector<28x128xf32>
    %6 = arith.mulf %4, %5 : vector<28x128xf32>
    %7 = vector.extract_strided_slice %1 {offsets = [0, 1], sizes = [28, 1], strides = [1, 1]} : vector<28x2xf32> to vector<28x1xf32>
    %8 = vector.extract_strided_slice %0 {offsets = [1, 0], sizes = [1, 128], strides = [1, 1]} : vector<2x128xf32> to vector<1x128xf32>
    %9 = vector.broadcast %7 : vector<28x1xf32> to vector<28x128xf32>
    %10 = vector.broadcast %8 : vector<1x128xf32> to vector<28x128xf32>
    %11 = arith.mulf %9, %10 : vector<28x128xf32>
    %12 = arith.addf %6, %11 : vector<28x128xf32>
    %c0_3 = arith.constant 0 : index
    %c0_4 = arith.constant 0 : index
    %13 = vector.load %arg4[%c0_3, %c0_4] : memref<28x1xf32, #tpu.memory_space<vmem>>, vector<28x1xf32>
    %14 = vector.broadcast %13 : vector<28x1xf32> to vector<28x128xf32>
    %15 = arith.addf %12, %14 : vector<28x128xf32>
    %cst = arith.constant 0.000000e+00 : f32
    %16 = vector.broadcast %cst : f32 to vector<28x128xf32>
    %17 = arith.maximumf %15, %16 : vector<28x128xf32>
    %c0_5 = arith.constant 0 : index
    %18 = memref.load %arg1[%c0_5] : memref<1xi32, #tpu.memory_space<smem>>
    %19 = tpu.iota {dimensions = array<i32: 0>} : vector<28x128xi32>
    %20 = tpu.iota {dimensions = array<i32: 1>} : vector<28x128xi32>
    %c128_i32 = arith.constant 128 : i32
    %21 = arith.muli %arg0, %c128_i32 : i32
    %22 = vector.broadcast %21 : i32 to vector<28x128xi32>
    %23 = arith.addi %20, %22 : vector<28x128xi32>
    %c32_i32 = arith.constant 32 : i32
    %24 = vector.broadcast %c32_i32 : i32 to vector<28x128xi32>
    %25 = arith.muli %23, %24 : vector<28x128xi32>
    %26 = arith.addi %25, %19 : vector<28x128xi32>
    %c-1640531527_i32 = arith.constant -1640531527 : i32
    %27 = arith.muli %18, %c-1640531527_i32 : i32
    %28 = vector.broadcast %27 : i32 to vector<28x128xi32>
    %29 = arith.xori %26, %28 : vector<28x128xi32>
    %c16_i32 = arith.constant 16 : i32
    %30 = vector.broadcast %c16_i32 : i32 to vector<28x128xi32>
    %31 = arith.shrui %29, %30 : vector<28x128xi32>
    %32 = arith.xori %29, %31 : vector<28x128xi32>
    %c2146121005_i32 = arith.constant 2146121005 : i32
    %33 = vector.broadcast %c2146121005_i32 : i32 to vector<28x128xi32>
    %34 = arith.muli %32, %33 : vector<28x128xi32>
    %c15_i32 = arith.constant 15 : i32
    %35 = vector.broadcast %c15_i32 : i32 to vector<28x128xi32>
    %36 = arith.shrui %34, %35 : vector<28x128xi32>
    %37 = arith.xori %34, %36 : vector<28x128xi32>
    %c-2073254261_i32 = arith.constant -2073254261 : i32
    %38 = vector.broadcast %c-2073254261_i32 : i32 to vector<28x128xi32>
    %39 = arith.muli %37, %38 : vector<28x128xi32>
    %c16_i32_6 = arith.constant 16 : i32
    %40 = vector.broadcast %c16_i32_6 : i32 to vector<28x128xi32>
    %41 = arith.shrui %39, %40 : vector<28x128xi32>
    %42 = arith.xori %39, %41 : vector<28x128xi32>
    %c-2048144789_i32 = arith.constant -2048144789 : i32
    %43 = vector.broadcast %c-2048144789_i32 : i32 to vector<28x128xi32>
    %44 = arith.xori %42, %43 : vector<28x128xi32>
    %c16_i32_7 = arith.constant 16 : i32
    %45 = vector.broadcast %c16_i32_7 : i32 to vector<28x128xi32>
    %46 = arith.shrui %44, %45 : vector<28x128xi32>
    %47 = arith.xori %44, %46 : vector<28x128xi32>
    %c2146121005_i32_8 = arith.constant 2146121005 : i32
    %48 = vector.broadcast %c2146121005_i32_8 : i32 to vector<28x128xi32>
    %49 = arith.muli %47, %48 : vector<28x128xi32>
    %c15_i32_9 = arith.constant 15 : i32
    %50 = vector.broadcast %c15_i32_9 : i32 to vector<28x128xi32>
    %51 = arith.shrui %49, %50 : vector<28x128xi32>
    %52 = arith.xori %49, %51 : vector<28x128xi32>
    %c-2073254261_i32_10 = arith.constant -2073254261 : i32
    %53 = vector.broadcast %c-2073254261_i32_10 : i32 to vector<28x128xi32>
    %54 = arith.muli %52, %53 : vector<28x128xi32>
    %c16_i32_11 = arith.constant 16 : i32
    %55 = vector.broadcast %c16_i32_11 : i32 to vector<28x128xi32>
    %56 = arith.shrui %54, %55 : vector<28x128xi32>
    %57 = arith.xori %54, %56 : vector<28x128xi32>
    %c1717986918_i32 = arith.constant 1717986918 : i32
    %58 = vector.broadcast %c1717986918_i32 : i32 to vector<28x128xi32>
    %59 = arith.cmpi uge, %57, %58 : vector<28x128xi32>
    %cst_12 = arith.constant 0.000000e+00 : f32
    %60 = vector.broadcast %cst_12 : f32 to vector<28x128xf32>
    %61 = arith.select %59, %17, %60 : vector<28x128xi1>, vector<28x128xf32>
    %c0_13 = arith.constant 0 : index
    %c0_14 = arith.constant 0 : index
    %62 = vector.load %arg5[%c0_13, %c0_14] : memref<2x28xf32, #tpu.memory_space<vmem>>, vector<2x28xf32>
    %cst_15 = arith.constant dense<0.000000e+00> : vector<2x128xf32>
    %63 = tpu.matmul %62, %61, %cst_15 {dimension_numbers = #tpu.dot_dimension_numbers<[1], [0], [0], [1], [0, 0, 1, 1], [], []>} : vector<2x28xf32>, vector<28x128xf32>, vector<2x128xf32> -> vector<2x128xf32>
    %c0_16 = arith.constant 0 : index
    %c0_17 = arith.constant 0 : index
    %64 = vector.load %arg6[%c0_16, %c0_17] : memref<2x1xf32, #tpu.memory_space<vmem>>, vector<2x1xf32>
    %65 = vector.broadcast %64 : vector<2x1xf32> to vector<2x128xf32>
    %66 = arith.addf %63, %65 : vector<2x128xf32>
    %c0_18 = arith.constant 0 : index
    %c0_19 = arith.constant 0 : index
    %67 = vector.load %arg7[%c0_18, %c0_19] : memref<2x128xf32, #tpu.memory_space<vmem>>, vector<2x128xf32>
    tpu.vector_store %arg7[%c0_18, %c0_19], %66 {strides = array<i32>} : memref<2x128xf32, #tpu.memory_space<vmem>>, vector<2x128xf32>,
    return
  }
  func.func @transform_0(%arg0: i32, %arg1: memref<1xi32, #tpu.memory_space<smem>>) -> (i32, i32) {
    %c0_i32 = arith.constant 0 : i32
    %c0_i32_0 = arith.constant 0 : i32
    return %c0_i32, %arg0 : i32, i32
  }
  func.func @transform_1(%arg0: i32, %arg1: memref<1xi32, #tpu.memory_space<smem>>) -> (i32, i32) {
    %c0_i32 = arith.constant 0 : i32
    %c0_i32_0 = arith.constant 0 : i32
    %c0_i32_1 = arith.constant 0 : i32
    return %c0_i32, %c0_i32_0 : i32, i32
  }
  func.func @transform_2(%arg0: i32, %arg1: memref<1xi32, #tpu.memory_space<smem>>) -> (i32, i32) {
    %c0_i32 = arith.constant 0 : i32
    %c0_i32_0 = arith.constant 0 : i32
    %c0_i32_1 = arith.constant 0 : i32
    return %c0_i32, %c0_i32_0 : i32, i32
  }
  func.func @transform_3(%arg0: i32, %arg1: memref<1xi32, #tpu.memory_space<smem>>) -> (i32, i32) {
    %c0_i32 = arith.constant 0 : i32
    %c0_i32_0 = arith.constant 0 : i32
    %c0_i32_1 = arith.constant 0 : i32
    return %c0_i32, %c0_i32_0 : i32, i32
  }
  func.func @transform_4(%arg0: i32, %arg1: memref<1xi32, #tpu.memory_space<smem>>) -> (i32, i32) {
    %c0_i32 = arith.constant 0 : i32
    %c0_i32_0 = arith.constant 0 : i32
    %c0_i32_1 = arith.constant 0 : i32
    return %c0_i32, %c0_i32_0 : i32, i32
  }
  func.func @transform_5(%arg0: i32, %arg1: memref<1xi32, #tpu.memory_space<smem>>) -> (i32, i32) {
    %c0_i32 = arith.constant 0 : i32
    %c0_i32_0 = arith.constant 0 : i32
    return %c0_i32, %arg0 : i32, i32
  }
}

</mosaic_0001>

<bundles_post_ra>
// kernel: tpu_custom_call.1
= control target key start
LH: loop header
LB: loop body
LE: loop exit
PB: predicated region body
PF: predicated region fallthrough
CT: control target
= control target key end

     0   :  { %v376_v1 = vmov 1   ;;  %v377_v2 = vmov 0   ;;  %s475_s0 = inlined_call_operand.<no memory space> [shape: s32[1], index: 0, kind: input, shape index: {}]   ;;  %s476_s1 = inlined_call_operand.vmem [shape: f32[2,128], index: 1, kind: input, shape index: {}]   ;;  %s477_s2 = inlined_call_operand.vmem [shape: f32[28,2], index: 2, kind: input, shape index: {}]   ;;  %s478_s3 = inlined_call_operand.vmem [shape: f32[28,1], index: 3, kind: input, shape index: {}]   ;;  %s479_s4 = inlined_call_operand.vmem [shape: f32[2,28], index: 4, kind: input, shape index: {}]   ;;  %s480_s5 = inlined_call_operand.vmem [shape: f32[2,1], index: 5, kind: input, shape index: {}]   ;;  %s481_s6 = inlined_call_operand.hbm [shape: f32[2,128], index: 6, kind: output, shape index: {}]  }
   0x1   :  { %v24_v0 = vld [vmem:[%s477_s2] sm:$0xff]  ;;  %350 = vset.pattern.permute.xlu1 %v376_v1  ;;  %349 = vset.pattern.permute.xlu0 %v377_v2  ;;  %v25_v3 = vld [vmem:[%s477_s2 + $0x8] sm:$0xff] }
   0x2   :  { %57 = vperm.xlu1 %350, %v24_v0   ;;  %30 = vperm.xlu0 %349, %v24_v0  }
   0x3   :  { %12 = vsyncpa [#allocation5], 0  ;;  %v27_v4 = vld [vmem:[%s477_s2 + $0x18] sm:$0xf]  ;;  %v26_v5 = vld [vmem:[%s477_s2 + $0x10] sm:$0xff]  ;;  %v378_v11 = vmov 0.0|0.0   ;;  %v48_v13 = vlaneseq }
   0x4   :  { %v84_v6 = vld [vmem:[%s478_s3] sm:$0xff]  ;;  %v85_v7 = vld [vmem:[%s478_s3 + $0x8] sm:$0xff]  ;;  %v87_v8 = vld [vmem:[%s478_s3 + $0x18] sm:$0xf]  ;;  %335 = vmatprep.subr.bf16.mxu0 %v378_v11  ;;  %vm379_vm0 = vmmov 0   ;;  %v380_v12 = vmov 0.0  }
   0x5   :  { %v86_v9 = vld [vmem:[%s478_s3 + $0x10] sm:$0xff]  ;;  %v215_v10 = vld [vmem:[%s480_s5] sm:$0x3]  ;;  %332 = vmatprep.mubr.msk.f32.mxu0 %vm379_vm0, %v380_v12  ;;  %v445_v14 = vshrl.u32 %v48_v13, 7  ;;  %v123_v15 = vand.u32 127, %v48_v13  ;;  %vm225_vm4 = vcmask 1043456  }
   0x6   :  { %61 = vperm.xlu1 %350, %v25_v3   ;;  %35 = vperm.xlu0 %349, %v25_v3   ;;  %s132_s15 = smul.u32 2654435769, %s475_s0  ;;  %vm221_vm8 = vcmask 228352   ;;  %s381_s17 = smov [#allocation4]  }
   0x7   :  { %v127_v16 = vmul.u32 32, %v123_v15  ;;  %v119_v17 = vadd.s32 8, %v445_v14  ;;  %v121_v18 = vadd.s32 24, %v445_v14  ;;  %v120_v21 = vadd.s32 16, %v445_v14  ;;  %s306_s18 = sshll.u32 %s381_s17, 4  ;;  %s307_s18 = int_to_ptr.vmem [resolvable:$true] %s306_s18 }
   0x8   :  { %v133_v22 = vstv %s132_s15  ;;  %s352_s19 = scalar_lea.vmem %s307_s18, 32  ;;  %p357_p1 = scmp.lt.s32.totalorder %s307_s18, %s307_s18 }
   0x9   :  { %v128_v19 = vadd.s32 %v127_v16, %v445_v14  ;;  %v129_v20 = vadd.s32 %v127_v16, %v119_v17  ;;  %v131_v23 = vadd.s32 %v127_v16, %v121_v18  ;;  %v130_v26 = vadd.s32 %v127_v16, %v120_v21  ;;  %p353_p0 = scmp.ne.s32.totalorder %s307_s18, %s352_s19  ;;  %p358_p2 = scmp.lt.s32.totalorder %s352_s19, %s352_s19 }
   0xa   :  { %69 = vperm.xlu1 %350, %v27_v4   ;;  %45 = vperm.xlu0 %349, %v27_v4  }
   0xb   :  { %v134_v24 = vxor.u32 %v133_v22, %v128_v19  ;;  %v135_v25 = vxor.u32 %v133_v22, %v129_v20  ;;  %v137_v27 = vxor.u32 %v133_v22, %v131_v23  ;;  %v136_v30 = vxor.u32 %v133_v22, %v130_v26  ;;  %p359_p3 = por %p358_p2, %p357_p1 }
   0xc   :  { %v74_v23 = vsub.s32 1, %v445_v14 }
   0xd   :  { %v138_v28 = vshrl.u32 %v134_v24, 16  ;;  %v139_v29 = vshrl.u32 %v135_v25, 16  ;;  %v141_v31 = vshrl.u32 %v137_v27, 16  ;;  %v140_v34 = vshrl.u32 %v136_v30, 16  ;;  %p360_p4 = pnand %p359_p3, %p353_p0 }
   0xe   :  { %65 = vperm.xlu1 %350, %v26_v5   ;;  %40 = vperm.xlu0 %349, %v26_v5  }
   0xf   :  { %v142_v32 = vxor.u32 %v138_v28, %v134_v24  ;;  %v143_v33 = vxor.u32 %v139_v29, %v135_v25  ;;  %v145_v35 = vxor.u32 %v141_v31, %v137_v27  ;;  %v144_v38 = vxor.u32 %v140_v34, %v136_v30  ;;  %v23_v25 = vld [vmem:[%s476_s1] sm:$0x3] }
  0x10   :  { %v50_v24 = vsub.s32 0, %v445_v14 }
  0x11   :  { %v146_v36 = vmul.u32 2146121005, %v142_v32  ;;  %v147_v37 = vmul.u32 2146121005, %v143_v33  ;;  %v75_v32 = vrot.slane %v23_v25, %v74_v23 }
  0x12   :  { %351 = vset.pattern.permute.xlu1 %v377_v2  ;;  %90 = vperm.xlu0 %349, %v84_v6   ;;  %v149_v39 = vmul.u32 2146121005, %v145_v35  ;;  %v148_v42 = vmul.u32 2146121005, %v144_v38  ;;  %v51_v33 = vrot.slane %v23_v25, %v50_v24 }
  0x13   :  { %95 = vperm.xlu1 %351, %v85_v7   ;;  %v150_v40 = vshrl.u32 %v146_v36, 15  ;;  %v151_v41 = vshrl.u32 %v147_v37, 15 }
  0x14   :  { %v153_v43 = vshrl.u32 %v149_v39, 15  ;;  %v152_v46 = vshrl.u32 %v148_v42, 15 }
  0x15   :  { %v154_v44 = vxor.u32 %v150_v40, %v146_v36  ;;  %v155_v45 = vxor.u32 %v151_v41, %v147_v37 }
  0x16   :  { %105 = vperm.xlu0 %349, %v87_v8   ;;  %v157_v47 = vxor.u32 %v153_v43, %v149_v39  ;;  %v156_v50 = vxor.u32 %v152_v46, %v148_v42 }
  0x17   :  { %100 = vperm.xlu1 %351, %v86_v9   ;;  %v158_v48 = vmul.u32 2221713035, %v154_v44  ;;  %v159_v49 = vmul.u32 2221713035, %v155_v45 }
  0x18   :  { %v161_v51 = vmul.u32 2221713035, %v157_v47  ;;  %v160_v54 = vmul.u32 2221713035, %v156_v50 }
  0x19   :  { %v162_v52 = vshrl.u32 %v158_v48, 16  ;;  %v163_v53 = vshrl.u32 %v159_v49, 16 }
  0x1a   :  { %218 = vperm.xlu0 %349, %v215_v10   ;;  %v165_v55 = vshrl.u32 %v161_v51, 16  ;;  %v164_v58 = vshrl.u32 %v160_v54, 16 }
  0x1b   :  { %v166_v56 = vxor.u32 %v162_v52, %v158_v48  ;;  %v167_v57 = vxor.u32 %v163_v53, %v159_v49 }
  0x1c   :  { %v169_v59 = vxor.u32 %v165_v55, %v161_v51  ;;  %v168_v62 = vxor.u32 %v164_v58, %v160_v54 }
  0x1d   :  { %v170_v60 = vxor.u32 2246822507, %v166_v56  ;;  %v171_v61 = vxor.u32 2246822507, %v167_v57 }
  0x1e   :  { %v173_v63 = vxor.u32 2246822507, %v169_v59  ;;  %v172_v2 = vxor.u32 2246822507, %v168_v62 }
  0x1f   :  { %v174_v0 = vshrl.u32 %v170_v60, 16  ;;  %v175_v1 = vshrl.u32 %v171_v61, 16 }
  0x20   :  { %v177_v3 = vshrl.u32 %v173_v63, 16  ;;  %v176_v6 = vshrl.u32 %v172_v2, 16 }
  0x21   :  { %v178_v4 = vxor.u32 %v174_v0, %v170_v60  ;;  %v179_v5 = vxor.u32 %v175_v1, %v171_v61 }
  0x22   :  { %v181_v7 = vxor.u32 %v177_v3, %v173_v63  ;;  %v180_v10 = vxor.u32 %v176_v6, %v172_v2 }
  0x23   :  { %v182_v8 = vmul.u32 2146121005, %v178_v4  ;;  %v183_v9 = vmul.u32 2146121005, %v179_v5 }
  0x24   :  { %v185_v12 = vmul.u32 2146121005, %v181_v7  ;;  %v184_v16 = vmul.u32 2146121005, %v180_v10  ;;  %v214_v10 = vld [vmem:[%s479_s4] sm:$0x3] }
  0x25   :  { %v186_v13 = vshrl.u32 %v182_v8, 15  ;;  %v187_v15 = vshrl.u32 %v183_v9, 15 }
  0x26   :  { %v189_v19 = vshrl.u32 %v185_v12, 15  ;;  %v188_v22 = vshrl.u32 %v184_v16, 15 }
  0x27   :  { %v190_v20 = vxor.u32 %v186_v13, %v182_v8  ;;  %v191_v21 = vxor.u32 %v187_v15, %v183_v9 }
  0x28   :  { %v193_v28 = vxor.u32 %v189_v19, %v185_v12  ;;  %v192_v31 = vxor.u32 %v188_v22, %v184_v16 }
  0x29   :  { %v194_v29 = vmul.u32 2221713035, %v190_v20  ;;  %v195_v30 = vmul.u32 2221713035, %v191_v21 }
  0x2a   :  { %v197_v36 = vmul.u32 2221713035, %v193_v28  ;;  %v196_v39 = vmul.u32 2221713035, %v192_v31 }
  0x2b   :  { %v198_v37 = vshrl.u32 %v194_v29, 16  ;;  %v199_v38 = vshrl.u32 %v195_v30, 16 }
  0x2c   :  { %v201_v45 = vshrl.u32 %v197_v36, 16  ;;  %v200_v48 = vshrl.u32 %v196_v39, 16 }
  0x2d   :  { %v202_v46 = vxor.u32 %v198_v37, %v194_v29  ;;  %v203_v47 = vxor.u32 %v199_v38, %v195_v30 }
  0x2e   :  { %v205_v58 = vxor.u32 %v201_v45, %v197_v36  ;;  %v204_v60 = vxor.u32 %v200_v48, %v196_v39 }
  0x2f   :  { %vm206_vm1 = vcmp.ge.u32.totalorder %v202_v46, 1717986918  ;;  %vm207_vm2 = vcmp.ge.u32.totalorder %v203_v47, 1717986918 }
  0x30   :  { %vm337_vm3 = vmpackc.low %vm207_vm2, %vm206_vm1  ;;  %vm209_vm5 = vcmp.ge.u32.totalorder %v205_v58, 1717986918  ;;  %vm208_vm6 = vcmp.ge.u32.totalorder %v204_v60, 1717986918 }
  0x31   :  { %vm341_vm7 = vmpackc.low %vm225_vm4, %vm208_vm6 }
  0x81   :  { %v58_v17 = vpop.permute.xlu1 %57  ;;  %v31_v18 = vpop.permute.xlu0 %30 }
  0x82   :  { %v76_v40 = vmul.f32 %v75_v32, %v58_v17  ;;  %v52_v14 = vmul.f32 %v51_v33, %v31_v18 }
  0x84   :  { %v80_v51 = vadd.f32 %v76_v40, %v52_v14 }
  0x85   :  { %v62_v26 = vpop.permute.xlu1 %61  ;;  %v36_v27 = vpop.permute.xlu0 %35 }
  0x86   :  { %v77_v41 = vmul.f32 %v75_v32, %v62_v26  ;;  %v53_v42 = vmul.f32 %v51_v33, %v36_v27 }
  0x88   :  { %v81_v55 = vadd.f32 %v77_v41, %v53_v42 }
  0x89   :  { %v70_v34 = vpop.permute.xlu1 %69  ;;  %v46_v35 = vpop.permute.xlu0 %45 }
  0x8a   :  { %v79_v49 = vmul.f32 %v75_v32, %v70_v34  ;;  %v55_v50 = vmul.f32 %v51_v33, %v46_v35 }
  0x8c   :  { %v83_v62 = vadd.f32 %v79_v49, %v55_v50 }
  0x8d   :  { %v66_v43 = vpop.permute.xlu1 %65  ;;  %v41_v44 = vpop.permute.xlu0 %40 }
  0x8e   :  { %v78_v52 = vmul.f32 %v75_v32, %v66_v43  ;;  %v54_v53 = vmul.f32 %v51_v33, %v41_v44 }
  0x90   :  { %v82_v1 = vadd.f32 %v78_v52, %v54_v53 }
  0x91   :  { %v91_v54 = vpop.permute.xlu0 %90 }
  0x92   :  { %v108_v56 = vadd.f32 %v91_v54, %v80_v51  ;;  %v96_v57 = vpop.permute.xlu1 %95 }
  0x93   :  { %v109_v59 = vadd.f32 %v96_v57, %v81_v55 }
  0x94   :  { %v112_v61 = vmax.f32 %v108_v56, 0.0 }
  0x95   :  { %v113_v63 = vmax.f32 %v109_v59, 0.0  ;;  %v106_v0 = vpop.permute.xlu0 %105 }
  0x96   :  { %v111_v2 = vadd.f32 %v106_v0, %v83_v62  ;;  %v101_v3 = vpop.permute.xlu1 %100 }
  0x97   :  { %v336_v4 = vpack.c.bf16 %v113_v63, %v112_v61  ;;  %v110_v5 = vadd.f32 %v101_v3, %v82_v1 }
  0x98   :  { %v115_v6 = vmax.f32 %v111_v2, 0.0 }
  0x99   :  { %v114_v7 = vmax.f32 %v110_v5, 0.0  ;;  %338 = vmatpush3.bf16.msk.msra.mxu0 %vm337_vm3, %v336_v4  ;;  %v219_v12 = vpop.permute.xlu0 %218 }
  0x9a   :  { %v213_v8 = vsel %vm209_vm5, %v115_v6, 0.0  ;;  %339 = vmatprep.subr.bf16.mxu0 %v378_v11 }
  0x9b   :  { %v340_v9 = vpack.c.bf16 %v213_v8, %v114_v7 }
  0x9d   :  { %342 = vmatpush3.bf16.msk.msra.mxu0 %vm341_vm7, %v340_v9 }
  0xa0   :  { %333 = vmatmul.mubr.msk.f32.vlgmr.msra.gmra.mrb[0].mxu0 %vm221_vm8, %v214_v10 }
 0x173   :  { %v295_v13 = vpop.f32.mrb[0].mxu0 }
 0x174   :  { %v296_v15 = vadd.f32 %v295_v13, %v219_v12  ;;  %v334_v16 = vpop.f32.mrb[1].mxu0 }
 0x176   :  { %299 = vst [vmem:[#allocation4] sm:$0x3] %v296_v15 }
 0x177   :  { %363 = shalt.err (!%p360_p4)
}
 0x178   :  { %s364_s4 = scalar_lea.hbm %s481_s6, 32 }
 0x179   :  { %p365_p5 = scmp.ne.s32.totalorder %s481_s6, %s364_s4  ;;  %p368_p6 = scmp.lt.u32.totalorder %s364_s4, %s481_s6 }
 0x17b   :  { %p370_p7 = pnand %p368_p6, %p365_p5 }
 0x17d   :  { %373 = shalt.err (!%p370_p7)
}
 0x17e   :  { %309 = dma.vmem_to_hbm [thread:$0]  %s307_s18, 32, %s481_s6, [#allocation5]  }
 0x17f   :  { %374 = dma.done.wait [#allocation5], 32  }
 0x180   :  { %375 = vsyncadd [#allocation5], 4294967264 }
 0x181   :  { %313 = vsyncpa [#allocation5], 1 }

</bundles_post_ra>
